<compile_context>
chip_gen: v6e
topology: v6e:2x2x1
jax: 0.10.0
libtpu: 0.0.40
codegen_flags: <defaults>
</compile_context>

<pallas_src>
import functools

import jax
import jax.numpy as jnp
from jax.experimental import pallas as pl
from jax.experimental.pallas import tpu as pltpu

NL = 2     # number of hidden layers
NN = 32    # hidden width
TB = 512   # collocation points (lanes) per grid step


def _mlp_kernel(x_ref, w_h_ref, vec_ref, out_ref):
    # x_ref   : (1, TB)        batch on lanes
    # w_h_ref : (NL, NN, NN)   hidden weights (torch (out,in) layout; H_new = W @ H)
    # vec_ref : (NN, NL + 4)   packed columns: [w_in, b_in, b_h_0..b_h_{NL-1}, w_out, b_out]
    # out_ref : (1, TB)
    x = x_ref[...]                                    # (1, TB)
    vec = vec_ref[...]                                # (NN, NL+4)

    # input layer: (NN,1) * (1,TB) broadcast (avoids a K=1 matmul)
    h = jnp.tanh(vec[:, 0:1] * x + vec[:, 1:2])       # (NN, TB)

    # hidden layers (NL is small & static -> unrolled python loop)
    for l in range(NL):
        w = w_h_ref[l]                                # (NN, NN)
        b = vec[:, 2 + l:3 + l]                       # (NN, 1)
        h = jnp.tanh(jnp.dot(w, h, preferred_element_type=jnp.float32) + b)

    # output layer: sublane reduction over NN; result stays lane-dense (1, TB)
    w_out = vec[:, 2 + NL:3 + NL]                     # (NN, 1)
    b_out = vec[0:1, 3 + NL:4 + NL]                   # (1, 1)
    out = jnp.sum(h * w_out, axis=0, keepdims=True) + b_out
    out_ref[...] = out.astype(out_ref.dtype)


@functools.partial(jax.jit, static_argnames=("tb",))
def net_forward(x, w_h_packed, vec, *, tb=TB):
    """x: (B, 1) float32. Returns (B, 1) float32 == torch Net.forward(x)."""
    b_total = x.shape[0]
    n_blocks = pl.cdiv(b_total, tb)
    b_pad = n_blocks * tb
    x_row = x.reshape(1, b_total)                     # free relayout: (B,1) and (1,B) share bytes
    if b_pad != b_total:
        x_row = jnp.pad(x_row, ((0, 0), (0, b_pad - b_total)))

    out_row = pl.pallas_call(
        _mlp_kernel,
        out_shape=jax.ShapeDtypeStruct((1, b_pad), jnp.float32),
        grid_spec=pltpu.PrefetchScalarGridSpec(
            num_scalar_prefetch=0,
            grid=(n_blocks,),
            in_specs=[
                pl.BlockSpec((1, tb), lambda i: (0, i)),           # x block (lane-dense)
                pl.BlockSpec((NL, NN, NN), lambda i: (0, 0, 0)),   # weights: VMEM-resident
                pl.BlockSpec((NN, NL + 4), lambda i: (0, 0)),      # packed vectors: resident
            ],
            out_specs=pl.BlockSpec((1, tb), lambda i: (0, i)),     # out block (lane-dense)
        ),
        compiler_params=pltpu.CompilerParams(
            dimension_semantics=("parallel",)),                    # v7x: shard batch over 2 TCs
    )(x_row, w_h_packed, vec)

    return out_row[0, :b_total].reshape(b_total, 1)


def init_params(key):
    """Deterministic synthetic params in torch layout (weights are (out, in))."""
    ks = jax.random.split(key, 6)
    w_in = jax.random.normal(ks[0], (NN, 1), jnp.float32) * 0.5          # Linear(1, NN).weight
    b_in = jax.random.normal(ks[1], (NN,), jnp.float32) * 0.1
    w_h = jax.random.normal(ks[2], (NL, NN, NN), jnp.float32) / jnp.sqrt(NN)
    b_h = jax.random.normal(ks[3], (NL, NN), jnp.float32) * 0.1
    w_out = jax.random.normal(ks[4], (1, NN), jnp.float32) / jnp.sqrt(NN)  # Linear(NN, 1).weight
    b_out = jax.random.normal(ks[5], (1,), jnp.float32) * 0.1
    return dict(w_in=w_in, b_in=b_in, w_h=w_h, b_h=b_h, w_out=w_out, b_out=b_out)


def pack_params(p):
    """Pack 7 torch-layout tensors into the 2 kernel operands (once, host-side)."""
    cols = [p["w_in"][:, 0], p["b_in"]]
    cols += [p["b_h"][l] for l in range(NL)]
    cols += [p["w_out"][0, :], jnp.full((NN,), p["b_out"][0], jnp.float32)]
    vec = jnp.stack(cols, axis=1)                     # (NN, NL + 4)
    return p["w_h"], vec                              # hidden weights used as-is (H_new = W @ H)


def net_forward_ref(x, p):
    """Pure-JAX reference with torch semantics for validation."""
    h = jnp.tanh(x @ p["w_in"].T + p["b_in"])
    for l in range(NL):
        h = jnp.tanh(h @ p["w_h"][l].T + p["b_h"][l])
    return h @ p["w_out"].T + p["b_out"]


if __name__ == "__main__":
    key = jax.random.PRNGKey(0)
    k_p, k_x = jax.random.split(key)
    params = init_params(k_p)
    w_h_packed, vec = pack_params(params)

    # collocation points in [0, 1] like a 1-D Richards-equation PINN input
    batch = 2048                                      # 4 pipelined grid steps of TB=512
    x = jax.random.uniform(k_x, (batch, 1), jnp.float32)

    out = net_forward(x, w_h_packed, vec)
    out = jax.block_until_ready(out)

    ref = net_forward_ref(x, params)
    assert out.shape == (batch, 1), out.shape
    max_err = jnp.max(jnp.abs(out - ref))
    assert jnp.allclose(out, ref, atol=1e-5, rtol=1e-5), f"max err {max_err}"
    print("KERNEL_OK")
</pallas_src>

<mosaic_0001>
module attributes {stable_mosaic.version = 11 : i64} {
  func.func @_mlp_kernel(%arg0: i32, %arg1: memref<1x512xf32, #tpu.memory_space<vmem>>, %arg2: memref<2x32x32xf32, #tpu.memory_space<vmem>>, %arg3: memref<32x6xf32, #tpu.memory_space<vmem>>, %arg4: memref<1x512xf32, #tpu.memory_space<vmem>>) attributes {dimension_semantics = [#tpu.dimension_semantics<parallel>], iteration_bounds = array<i64: 4>, scalar_prefetch = 0 : i64, scratch_operands = 0 : i64, tpu.core_type = #tpu.core_type<tc>, window_params = [{transform_indices = @transform_0, window_bounds = array<i64: 1, 512>}, {pipeline_mode = #tpu.pipeline_mode<synchronous>, transform_indices = @transform_1, window_bounds = array<i64: 2, 32, 32>}, {pipeline_mode = #tpu.pipeline_mode<synchronous>, transform_indices = @transform_2, window_bounds = array<i64: 32, 6>}, {transform_indices = @transform_3, window_bounds = array<i64: 1, 512>}]} {
    %c0 = arith.constant 0 : index
    %c0_0 = arith.constant 0 : index
    %0 = vector.load %arg1[%c0, %c0_0] : memref<1x512xf32, #tpu.memory_space<vmem>>, vector<1x512xf32>
    %c0_1 = arith.constant 0 : index
    %c0_2 = arith.constant 0 : index
    %1 = vector.load %arg3[%c0_1, %c0_2] : memref<32x6xf32, #tpu.memory_space<vmem>>, vector<32x6xf32>
    %2 = vector.extract_strided_slice %1 {offsets = [0, 0], sizes = [32, 1], strides = [1, 1]} : vector<32x6xf32> to vector<32x1xf32>
    %3 = vector.broadcast %2 : vector<32x1xf32> to vector<32x512xf32>
    %4 = vector.broadcast %0 : vector<1x512xf32> to vector<32x512xf32>
    %5 = arith.mulf %3, %4 : vector<32x512xf32>
    %6 = vector.extract_strided_slice %1 {offsets = [0, 1], sizes = [32, 1], strides = [1, 1]} : vector<32x6xf32> to vector<32x1xf32>
    %7 = vector.broadcast %6 : vector<32x1xf32> to vector<32x512xf32>
    %8 = arith.addf %5, %7 : vector<32x512xf32>
    %9 = math.tanh %8 : vector<32x512xf32>
    %c0_3 = arith.constant 0 : index
    %c0_4 = arith.constant 0 : index
    %c0_5 = arith.constant 0 : index
    %10 = vector.load %arg2[%c0_3, %c0_4, %c0_5] : memref<2x32x32xf32, #tpu.memory_space<vmem>>, vector<1x32x32xf32>
    %11 = vector.shape_cast %10 : vector<1x32x32xf32> to vector<32x32xf32>
    %12 = vector.extract_strided_slice %1 {offsets = [0, 2], sizes = [32, 1], strides = [1, 1]} : vector<32x6xf32> to vector<32x1xf32>
    %cst = arith.constant dense<0.000000e+00> : vector<32x512xf32>
    %13 = tpu.matmul %11, %9, %cst {dimension_numbers = #tpu.dot_dimension_numbers<[1], [0], [0], [1], [0, 0, 1, 1], [], []>} : vector<32x32xf32>, vector<32x512xf32>, vector<32x512xf32> -> vector<32x512xf32>
    %14 = vector.broadcast %12 : vector<32x1xf32> to vector<32x512xf32>
    %15 = arith.addf %13, %14 : vector<32x512xf32>
    %16 = math.tanh %15 : vector<32x512xf32>
    %c1 = arith.constant 1 : index
    %c0_6 = arith.constant 0 : index
    %c0_7 = arith.constant 0 : index
    %17 = vector.load %arg2[%c1, %c0_6, %c0_7] : memref<2x32x32xf32, #tpu.memory_space<vmem>>, vector<1x32x32xf32>
    %18 = vector.shape_cast %17 : vector<1x32x32xf32> to vector<32x32xf32>
    %19 = vector.extract_strided_slice %1 {offsets = [0, 3], sizes = [32, 1], strides = [1, 1]} : vector<32x6xf32> to vector<32x1xf32>
    %cst_8 = arith.constant dense<0.000000e+00> : vector<32x512xf32>
    %20 = tpu.matmul %18, %16, %cst_8 {dimension_numbers = #tpu.dot_dimension_numbers<[1], [0], [0], [1], [0, 0, 1, 1], [], []>} : vector<32x32xf32>, vector<32x512xf32>, vector<32x512xf32> -> vector<32x512xf32>
    %21 = vector.broadcast %19 : vector<32x1xf32> to vector<32x512xf32>
    %22 = arith.addf %20, %21 : vector<32x512xf32>
    %23 = math.tanh %22 : vector<32x512xf32>
    %24 = vector.extract_strided_slice %1 {offsets = [0, 4], sizes = [32, 1], strides = [1, 1]} : vector<32x6xf32> to vector<32x1xf32>
    %25 = vector.extract_strided_slice %1 {offsets = [0, 5], sizes = [1, 1], strides = [1, 1]} : vector<32x6xf32> to vector<1x1xf32>
    %26 = vector.broadcast %24 : vector<32x1xf32> to vector<32x512xf32>
    %27 = arith.mulf %23, %26 : vector<32x512xf32>
    %cst_9 = arith.constant dense<0.000000e+00> : vector<512xf32>
    %28 = vector.multi_reduction <add>, %27, %cst_9 [0] : vector<32x512xf32> to vector<512xf32>
    %29 = vector.shape_cast %28 : vector<512xf32> to vector<1x512xf32>
    %30 = vector.broadcast %25 : vector<1x1xf32> to vector<1x512xf32>
    %31 = arith.addf %29, %30 : vector<1x512xf32>
    %c0_10 = arith.constant 0 : index
    %c0_11 = arith.constant 0 : index
    %32 = vector.load %arg4[%c0_10, %c0_11] : memref<1x512xf32, #tpu.memory_space<vmem>>, vector<1x512xf32>
    tpu.vector_store %arg4[%c0_10, %c0_11], %31 {strides = array<i32>} : memref<1x512xf32, #tpu.memory_space<vmem>>, vector<1x512xf32>,
    return
  }
  func.func @transform_0(%arg0: i32) -> (i32, i32) {
    %c0_i32 = arith.constant 0 : i32
    %c0_i32_0 = arith.constant 0 : i32
    return %c0_i32, %arg0 : i32, i32
  }
  func.func @transform_1(%arg0: i32) -> (i32, i32, i32) {
    %c0_i32 = arith.constant 0 : i32
    %c0_i32_0 = arith.constant 0 : i32
    %c0_i32_1 = arith.constant 0 : i32
    %c0_i32_2 = arith.constant 0 : i32
    return %c0_i32, %c0_i32_0, %c0_i32_1 : i32, i32, i32
  }
  func.func @transform_2(%arg0: i32) -> (i32, i32) {
    %c0_i32 = arith.constant 0 : i32
    %c0_i32_0 = arith.constant 0 : i32
    %c0_i32_1 = arith.constant 0 : i32
    return %c0_i32, %c0_i32_0 : i32, i32
  }
  func.func @transform_3(%arg0: i32) -> (i32, i32) {
    %c0_i32 = arith.constant 0 : i32
    %c0_i32_0 = arith.constant 0 : i32
    return %c0_i32, %arg0 : i32, i32
  }
}

</mosaic_0001>

<bundles_post_ra>
// kernel: net_forward.1
= control target key start
LH: loop header
LB: loop body
LE: loop exit
PB: predicated region body
PF: predicated region fallthrough
CT: control target
= control target key end

     0   :  { %8 = vsyncpa [#allocation3], 0  ;;  %s1449_s0 = inlined_call_operand.vmem [shape: f32[1,2048], index: 0, kind: input, shape index: {}]   ;;  %s1450_s1 = inlined_call_operand.hbm [shape: f32[2,32,32], index: 1, kind: input, shape index: {}]   ;;  %s1451_s2 = inlined_call_operand.vmem [shape: f32[32,6], index: 2, kind: input, shape index: {}]   ;;  %s1452_s3 = inlined_call_operand.hbm [shape: f32[1,2048], index: 3, kind: output, shape index: {}]  }
   0x1   :  { %9 = vsyncpa [#allocation4], 0 }
   0x2   :  { %11 = vsyncpa [#allocation4 + $0x1], 0  ;;  %s1263_s12 = smov 0   ;;  %s1265_s13 = smov 0  }
   0x3   :  { %s1267_s14 = smov 0   ;;  %s1269_s15 = smov 0  }
   0x4 LB: > { %s1284_s16 = sadd.s32 4294967295, %s1229_s15   ;;  %s941_s17 = sadd.s32 4294967294, %s1229_s15   ;;  %s1229_s15 = sphi %s1269_s15, %s1460_s15   ;;  %s1225_s14 = sphi %s1267_s14, %s1459_s14   ;;  %s1221_s13 = sphi %s1265_s13, %s1458_s13   ;;  %s1217_s12 = sphi %s1263_s12, %s1457_s12  }
   0x5   : > { %s1288_s18 = sadd.s32 1, %s1229_s15   ;;  %s92_s19 = sadd.s32 1, %s1225_s14 }
   0x6   : > { %s89_s20 = ssub.s32 %s1229_s15, %s1288_s18  ;;  %p102_p0 = scmp.ne.s32.totalorder %s1225_s14, %s1221_s13 }
   0x7   : > { %p90_p1 = scmp.eq.s32.totalorder %s89_s20, 0  ;;  %p103_p2 = scmp.eq.s32.totalorder %s1284_s16, 3 }
   0x8   : > { %p108_p3 = scmp.ne.s32.totalorder %s1221_s13, %s1217_s12  ;;  %p109_p4 = scmp.eq.s32.totalorder %s941_s17, 3 }
   0x9   : > { %s1299_s21 = scalar_select %p90_p1, %s1225_s14, %s92_s19  }
   0xa   : > { %p1301_p5 = por %p103_p2, %p102_p0  ;;  %p1305_p6 = por %p109_p4, %p108_p3 }
   0xb   : > { %p942_p7 = scmp.ge.s32.totalorder %s1229_s15, 1  ;;  %p116_p8 = scmp.lt.s32.totalorder %s1229_s15, 5 }
   0xc   : > { %s1454_s23 = scalar_select %p1305_p6, 1, 0 }
   0xd   : > { %p985_p9 = scmp.eq.s32.totalorder %s1284_s16, 0  ;;  %p1312_p10 = pnand %p942_p7, %p116_p8 }
   0xe   : > { %s1231_s25 = smov [#allocation2]  }
   0xf   : > { %s128_s26 = sshll.u32 %s1231_s25, 4  ;;  %p977_p11 = pneg %p1312_p10  ;;  %s129_s26 = int_to_ptr.vmem [resolvable:$true] %s128_s26 }
  0x10   : > { %s1150_s27 = scalar_lea.vmem %s129_s26, 1024  ;;  %p1158_p3 = scmp.lt.s32.totalorder %s129_s26, %s129_s26 }
  0x11   : > { %p978_p12 = pnand %p985_p9, %p977_p11  ;;  %p1151_p0 = scmp.ne.s32.totalorder %s129_s26, %s1150_s27 }
  0x12   : > { %p1159_p4 = scmp.lt.s32.totalorder %s1150_s27, %s1150_s27 }
  0x13   : > { %p1141_p13 = pneg %p978_p12 }
  0x14   : > { %p1160_p6 = por %p1159_p4, %p1158_p3 }
  0x15   : > { %p1153_p1 = pnand %p1151_p0, %p1141_p13 }
  0x17   : > { %p1154_p2 = pneg %p1153_p1 }
  0x19   : > { %p1161_p7 = pnand %p1160_p6, %p1154_p2 }
  0x1b   : > { %1164 = shalt.err (!%p1161_p7)
}
  0x1c   : > { %s1232_s28 = smov 128   ;;  %s1233_s29 = smov 8  }
  0x1d   : > { %980 = dma.hbm_to_vmem [thread:$0]  (!%p978_p12), %s1450_s1, 1024, %s129_s26, [#allocation3], %s1232_s28, %s1232_s28, %s1233_s29  }
  0x1e   : > { %155 = sbr.rel (%p1312_p10) target bundleno = 692 (0x2b4), region = 32 }
  0x23   : > { %1208 = dma.done.wait (%p985_p9), [#allocation3], 1024  }
  0x24   : > { %1210 = vsyncadd (%p985_p9), [#allocation3], 4294966272  ;;  %v1234_v0 = vmov 1   ;;  %v1235_v1 = vmov 0   ;;  %v1332_v2 = vld [vmem:[%s1451_s2 + $0x18] sm:$0xff]  ;;  %v1339_v3 = vld [vmem:[%s1451_s2 + $0x10] sm:$0xff]  ;;  %v210_v8 = vlaneseq }
  0x25   : > { %1032 = vset.pattern.permute.xlu1 %v1234_v0  ;;  %1031 = vset.pattern.permute.xlu0 %v1235_v1  ;;  %v1344_v4 = vld [vmem:[%s1451_s2 + $0x8] sm:$0xff]  ;;  %v1351_v5 = vld [vmem:[%s1451_s2] sm:$0xff]  ;;  %v1236_v6 = vmov 0.0   ;;  %v1237_v7 = vmov 2   ;;  %s948_s19 = sshll.u32 %s1284_s16, 2  ;;  %vm314_vm0 = vcmask 261120  }
  0x26   : > { %259 = vperm.xlu1 %1032, %v1332_v2   ;;  %206 = vperm.xlu0 %1031, %v1332_v2   ;;  %p179_p6 = scmp.lt.s32.totalorder %s948_s19, 15  ;;  %v1365_v9 = vshrl.u32 %v210_v8, 7  ;;  %s175_s26 = sand.u32 1, %s1221_s13   ;;  %vm855_vm1 = vcmp.lt.s32.totalorder %v210_v8, 512 }
  0x27   : > { %391 = vmatprep.mubr.f32.mxu0 %v1236_v6  ;;  %480 = vmatprep.mubr.f32.mxu1 %v1236_v6  ;;  %s947_s27 = sshll.u32 %s175_s26, 2  ;;  %s970_s28 = sshll.u32 %s1284_s16, 6 }
  0x28   : > { %s1462_s19 = smov (!%p179_p6, %s948_s19), 15  ;;  %v212_v10 = vsub.s32 0, %v1365_v9  ;;  %v220_v11 = vsub.s32 2, %v1365_v9  ;;  %v216_v12 = vsub.s32 1, %v1365_v9  ;;  %v224_v13 = vsub.s32 3, %v1365_v9  ;;  %s177_s29 = scalar_lea.vmem [#allocation5], %s947_s27 }
  0x29   : > { %s181_s25 = scalar_lea.vmem %s1449_s0, %s1462_s19  ;;  %s873_s30 = sshll.u32 %s177_s29, 4  ;;  %s874_s30 = int_to_ptr.vmem [resolvable:$true] %s873_s30 }
  0x2a   : > { %1033 = vset.pattern.permute.xlu1 %v1235_v1  ;;  %201 = vperm.xlu0 %1031, %v1339_v3   ;;  %v184_v14 = vld [vmem:[%s181_s25] sm:$0xf]  ;;  %s871_s6 = scalar_lea.hbm %s1452_s3, %s970_s28  ;;  %s859_s7 = scalar_lea.sflag [#allocation4], %s175_s26 }
  0x2b   : > { %196 = vperm.xlu1 %1033, %v1344_v4   ;;  %v213_v15 = vrot.slane %v184_v14, %v212_v10  ;;  %v221_v16 = vrot.slane %v184_v14, %v220_v11  ;;  %v217_v17 = vrot.slane %v184_v14, %v216_v12  ;;  %v225_v18 = vrot.slane %v184_v14, %v224_v13  ;;  %s1165_s8 = scalar_lea.vmem %s874_s30, 64  ;;  %s1242_s9 = smov [#allocation5]  }
  0x2c   : > { %p1166_p8 = scmp.ne.s32.totalorder %s874_s30, %s1165_s8  ;;  %s1169_s16 = sshll.u32 %s1242_s9, 4  ;;  %s1170_s16 = int_to_ptr.vmem [resolvable:$false] %s1169_s16 }
  0x2d   : > { %s1171_s10 = scalar_lea.vmem %s1170_s16, 128  ;;  %p1172_p11 = scmp.lt.s32.totalorder %s874_s30, %s1170_s16 }
  0x2e   : > { %1034 = vset.pattern.permute.xlu0 %v1234_v0  ;;  %p1167_p9 = pnand %p1166_p8, %p1301_p5  ;;  %p1173_p12 = scmp.lt.s32.totalorder %s1171_s10, %s1165_s8 }
  0x2f   : > { %255 = vperm.xlu0 %1034, %v1339_v3   ;;  %191 = vperm.xlu1 %1033, %v1351_v5  }
  0x30   : > { %p1168_p10 = pneg %p1167_p9  ;;  %p1174_p13 = por %p1173_p12, %p1172_p11 }
  0x32   : > { %p1175_p0 = pnand %p1174_p13, %p1168_p10 }
  0x33   : > { %247 = vperm.xlu0 %1034, %v1351_v5   ;;  %1035 = vset.pattern.permute.xlu1 %v1234_v0 }
  0x34   : > { %251 = vperm.xlu1 %1035, %v1344_v4  }
  0x37   : > { %1037 = vset.pattern.permute.xlu0 %v1237_v7 }
  0x38   : > { %1036 = vset.pattern.permute.xlu1 %v1237_v7  ;;  %307 = vperm.xlu0 %1037, %v1339_v3  }
  0x39   : > { %311 = vperm.xlu1 %1036, %v1332_v2  }
  0x3d   : > { %303 = vperm.xlu1 %1036, %v1344_v4  }
  0x41   : > { %299 = vperm.xlu1 %1036, %v1351_v5  }
  0xa1   : > { %v260_v19 = vpop.permute.xlu1 %259  ;;  %v207_v20 = vpop.permute.xlu0 %206 }
  0xa2   : > { %v242_v21 = vmul.f32 %v213_v15, %v207_v20  ;;  %v244_v22 = vmul.f32 %v221_v16, %v207_v20  ;;  %v243_v23 = vmul.f32 %v217_v17, %v207_v20  ;;  %v245_v24 = vmul.f32 %v225_v18, %v207_v20  ;;  %v296_v20 = vld [vmem:[#allocation2 + $0x10] sm:$0xff] }
  0xa4   : > { %v274_v25 = vadd.f32 %v260_v19, %v242_v21  ;;  %v276_v26 = vadd.f32 %v260_v19, %v244_v22  ;;  %v275_v27 = vadd.f32 %v260_v19, %v243_v23  ;;  %v277_v29 = vadd.f32 %v260_v19, %v245_v24  ;;  %v295_v19 = vld [vmem:[#allocation2 + $0x8] sm:$0xff]  ;;  %v297_v21 = vld [vmem:[#allocation2 + $0x18] sm:$0xff] }
  0xa5   : > { %v202_v28 = vpop.permute.xlu0 %201  ;;  %v1238_v22 = vmov 3   ;;  %v1239_v23 = vmov 4   ;;  %v1240_v24 = vmov 5  }
  0xa6   : > { %1043 = vtanh.f32 %v274_v25  ;;  %v197_v30 = vpop.permute.xlu1 %196  ;;  %v238_v31 = vmul.f32 %v213_v15, %v202_v28  ;;  %v239_v32 = vmul.f32 %v217_v17, %v202_v28  ;;  %v240_v33 = vmul.f32 %v221_v16, %v202_v28  ;;  %1039 = vset.pattern.permute.xlu1 %v1238_v22  ;;  %1038 = vset.pattern.permute.xlu0 %v1238_v22 }
  0xa7   : > { %1045 = vtanh.f32 %v276_v26  ;;  %v241_v34 = vmul.f32 %v225_v18, %v202_v28  ;;  %v234_v43 = vmul.f32 %v213_v15, %v197_v30  ;;  %v235_v45 = vmul.f32 %v217_v17, %v197_v30  ;;  %531 = vperm.xlu1 %1039, %v1344_v4   ;;  %527 = vperm.xlu0 %1038, %v1351_v5  }
  0xa8   : > { %1047 = vtanh.f32 %v275_v27  ;;  %v236_v47 = vmul.f32 %v221_v16, %v197_v30  ;;  %v237_v49 = vmul.f32 %v225_v18, %v197_v30 }
  0xa9   : > { %1049 = vtanh.f32 %v277_v29 }
  0xaa   : > { %v256_v35 = vpop.permute.xlu0 %255  ;;  %v192_v36 = vpop.permute.xlu1 %191 }
  0xab   : > { %v270_v37 = vadd.f32 %v256_v35, %v238_v31  ;;  %v271_v38 = vadd.f32 %v256_v35, %v239_v32  ;;  %v272_v39 = vadd.f32 %v256_v35, %v240_v33  ;;  %v273_v40 = vadd.f32 %v256_v35, %v241_v34  ;;  %535 = vperm.xlu1 %1039, %v1339_v3  }
  0xac   : > { %v231_v41 = vmul.f32 %v217_v17, %v192_v36  ;;  %v230_v52 = vmul.f32 %v213_v15, %v192_v36  ;;  %v233_v55 = vmul.f32 %v225_v18, %v192_v36  ;;  %v232_v58 = vmul.f32 %v221_v16, %v192_v36  ;;  %v294_v15 = vld [vmem:[#allocation2] sm:$0xff]  ;;  %539 = vperm.xlu0 %1038, %v1332_v2  }
  0xad   : > { %1051 = vtanh.f32 %v270_v37 }
  0xae   : > { %1053 = vtanh.f32 %v271_v38  ;;  %v248_v42 = vpop.permute.xlu0 %247 }
  0xaf   : > { %1055 = vtanh.f32 %v272_v39  ;;  %v252_v44 = vpop.permute.xlu1 %251  ;;  %v263_v46 = vadd.f32 %v248_v42, %v231_v41  ;;  %v262_v59 = vadd.f32 %v248_v42, %v230_v52  ;;  %v265_v61 = vadd.f32 %v248_v42, %v233_v55  ;;  %1040 = vset.pattern.permute.xlu1 %v1239_v23 }
  0xb0   : > { %1057 = vtanh.f32 %v273_v40  ;;  %v266_v48 = vadd.f32 %v252_v44, %v234_v43  ;;  %v267_v50 = vadd.f32 %v252_v44, %v235_v45  ;;  %v268_v53 = vadd.f32 %v252_v44, %v236_v47  ;;  %1041 = vset.pattern.permute.xlu0 %v1239_v23  ;;  %749 = vperm.xlu1 %1040, %v1351_v5  }
  0xb1   : > { %1059 = vtanh.f32 %v263_v46  ;;  %v269_v56 = vadd.f32 %v252_v44, %v237_v49  ;;  %v264_v62 = vadd.f32 %v248_v42, %v232_v58  ;;  %753 = vperm.xlu0 %1041, %v1344_v4  }
  0xb2   : > { %1061 = vtanh.f32 %v266_v48 }
  0xb3   : > { %v1044_v51 = vpop.eup %1043  ;;  %1063 = vtanh.f32 %v267_v50  ;;  %v308_v4 = vpop.permute.xlu0 %307 }
  0xb4   : > { %v1046_v54 = vpop.eup %1045  ;;  %1065 = vtanh.f32 %v268_v53  ;;  %757 = vperm.xlu1 %1040, %v1339_v3   ;;  %v312_v25 = vpop.permute.xlu1 %311 }
  0xb5   : > { %v1048_v57 = vpop.eup %1047  ;;  %1067 = vtanh.f32 %v269_v56  ;;  %1042 = vset.pattern.permute.xlu0 %v1240_v24 }
  0xb6   : > { %v1050_v60 = vpop.eup %1049  ;;  %351 = vmatprep.subr.mxu0 %v1048_v57  ;;  %1069 = vtanh.f32 %v262_v59  ;;  %817 = vperm.xlu0 %1042, %v1351_v5  }
  0xb7   : > { %440 = vmatprep.subr.mxu1 %v1050_v60  ;;  %352 = vmatpush1.msra.mxu0 %v1044_v51  ;;  %1071 = vtanh.f32 %v265_v61 }
  0xb8   : > { %441 = vmatpush1.msra.mxu1 %v1046_v54  ;;  %1073 = vtanh.f32 %v264_v62  ;;  %761 = vperm.xlu1 %1040, %v1332_v2   ;;  %v304_v26 = vpop.permute.xlu1 %303 }
  0xba   : > { %v1052_v63 = vpop.eup %1051 }
  0xbb   : > { %v1054_v0 = vpop.eup %1053 }
  0xbc   : > { %v1056_v1 = vpop.eup %1055  ;;  %353 = vmatprep.subr.mxu0 %v1054_v0  ;;  %v300_v30 = vpop.permute.xlu1 %299 }
  0xbd   : > { %v1058_v7 = vpop.eup %1057  ;;  %354 = vmatpush1.msra.mxu0 %v1052_v63 }
  0xbe   : > { %442 = vmatprep.subr.mxu1 %v1058_v7  ;;  %v1060_v10 = vpop.eup %1059 }
  0xbf   : > { %443 = vmatpush1.msra.mxu1 %v1056_v1  ;;  %v1062_v11 = vpop.eup %1061 }
  0xc0   : > { %v1064_v12 = vpop.eup %1063 }
  0xc1   : > { %v1066_v13 = vpop.eup %1065  ;;  %355 = vmatprep.subr.mxu0 %v1064_v12 }
  0xc2   : > { %v1068_v14 = vpop.eup %1067  ;;  %356 = vmatpush1.msra.mxu0 %v1062_v11 }
  0xc3   : > { %v1070_v16 = vpop.eup %1069  ;;  %444 = vmatprep.subr.mxu1 %v1068_v14  ;;  %357 = vmatprep.subr.mxu0 %v1060_v10  ;;  %v522_v14 = vld [vmem:[#allocation2 + $0x20] sm:$0xff] }
  0xc4   : > { %v1072_v17 = vpop.eup %1071  ;;  %445 = vmatpush1.msra.mxu1 %v1066_v13  ;;  %358 = vmatpush1.msra.mxu0 %v1070_v16 }
  0xc5   : > { %v1074_v18 = vpop.eup %1073  ;;  %446 = vmatprep.subr.mxu1 %v1072_v17  ;;  %949 = vmatmul.mubr.msk.f32.vlgmr.msra.gmra.mxu0 %vm314_vm0, %v294_v15  ;;  %v523_v17 = vld [vmem:[#allocation2 + $0x28] sm:$0xff] }
  0xc6   : > { %447 = vmatpush1.msra.mxu1 %v1074_v18  ;;  %397 = vmatprep.mubr.f32.mxu0 %v1236_v6  ;;  %v524_v18 = vld [vmem:[#allocation2 + $0x30] sm:$0xff] }
  0xc7   : > { %953 = vmatmul.mubr.msk.f32.vlgmr.msra.gmra.mxu1 %vm314_vm0, %v294_v15 }
  0xc8   : > { %486 = vmatprep.mubr.f32.mxu1 %v1236_v6 }
  0xc9   : > { %950 = vmatmul.mubr.msk.f32.gmra.mxu0 %vm314_vm0, %v295_v19 }
  0xca   : > { %403 = vmatprep.mubr.f32.mxu0 %v1236_v6 }
  0xcb   : > { %954 = vmatmul.mubr.msk.f32.gmra.mxu1 %vm314_vm0, %v295_v19  ;;  %v525_v19 = vld [vmem:[#allocation2 + $0x38] sm:$0xff] }
  0xcc   : > { %492 = vmatprep.mubr.f32.mxu1 %v1236_v6 }
  0xcd   : > { %951 = vmatmul.mubr.msk.f32.gmra.mxu0 %vm314_vm0, %v296_v20 }
  0xce   : > { %409 = vmatprep.mubr.f32.mxu0 %v1236_v6 }
  0xcf   : > { %955 = vmatmul.mubr.msk.f32.gmra.mxu1 %vm314_vm0, %v296_v20 }
  0xd0   : > { %498 = vmatprep.mubr.f32.mxu1 %v1236_v6 }
  0xd1   : > { %952 = vmatmul.mubr.msk.f32.gmra.mxu0 %vm314_vm0, %v297_v21 }
  0xd2   : > { %618 = vmatprep.mubr.f32.mxu0 %v1236_v6 }
  0xd3   : > { %956 = vmatmul.mubr.msk.f32.gmra.mxu1 %vm314_vm0, %v297_v21 }
  0xd4   : > { %707 = vmatprep.mubr.f32.mxu1 %v1236_v6 }
 0x122   : > { %v528_v20 = vpop.permute.xlu0 %527  ;;  %v532_v22 = vpop.permute.xlu1 %531 }
 0x185   : > { %v393_v27 = vpop.f32.mrf.mxu0 }
 0x186   : > { %v394_v35 = vadd.f32 %v393_v27, %v300_v30 }
 0x187   : > { %v482_v28 = vpop.f32.mrf.mxu1  ;;  %v395_v29 = vpop.f32.mrf.mxu0 }
 0x188   : > { %v396_v36 = vadd.f32 %v395_v29, %v300_v30  ;;  %1075 = vtanh.f32 %v394_v35  ;;  %v483_v56 = vadd.f32 %v482_v28, %v300_v30 }
 0x189   : > { %v484_v31 = vpop.f32.mrf.mxu1  ;;  %v399_v32 = vpop.f32.mrf.mxu0 }
 0x18a   : > { %v400_v38 = vadd.f32 %v399_v32, %v304_v26  ;;  %1077 = vtanh.f32 %v396_v36  ;;  %v485_v55 = vadd.f32 %v484_v31, %v300_v30 }
 0x18b   : > { %v488_v33 = vpop.f32.mrf.mxu1  ;;  %v401_v34 = vpop.f32.mrf.mxu0 }
 0x18c   : > { %v402_v39 = vadd.f32 %v401_v34, %v304_v26  ;;  %1079 = vtanh.f32 %v400_v38  ;;  %v489_v54 = vadd.f32 %v488_v33, %v304_v26  ;;  %v536_v34 = vpop.permute.xlu1 %535 }
 0x18d   : > { %v490_v3 = vpop.f32.mrf.mxu1  ;;  %v405_v37 = vpop.f32.mrf.mxu0 }
 0x18e   : > { %v406_v2 = vadd.f32 %v405_v37, %v308_v4  ;;  %1081 = vtanh.f32 %v402_v39  ;;  %v491_v53 = vadd.f32 %v490_v3, %v304_v26 }
 0x18f   : > { %v494_v5 = vpop.f32.mrf.mxu1  ;;  %v407_v40 = vpop.f32.mrf.mxu0 }
 0x190   : > { %v408_v41 = vadd.f32 %v407_v40, %v308_v4  ;;  %1083 = vtanh.f32 %v406_v2  ;;  %v495_v52 = vadd.f32 %v494_v5, %v308_v4 }
 0x191   : > { %v496_v42 = vpop.f32.mrf.mxu1  ;;  %v411_v43 = vpop.f32.mrf.mxu0 }
 0x192   : > { %v412_v44 = vadd.f32 %v411_v43, %v312_v25  ;;  %1085 = vtanh.f32 %v408_v41  ;;  %v497_v50 = vadd.f32 %v496_v42, %v308_v4  ;;  %v540_v42 = vpop.permute.xlu0 %539 }
 0x193   : > { %v500_v45 = vpop.f32.mrf.mxu1  ;;  %v413_v46 = vpop.f32.mrf.mxu0 }
 0x194   : > { %v414_v47 = vadd.f32 %v413_v46, %v312_v25  ;;  %v501_v48 = vadd.f32 %v500_v45, %v312_v25  ;;  %1087 = vtanh.f32 %v412_v44 }
 0x195   : > { %v502_v49 = vpop.f32.mrf.mxu1  ;;  %v1076_v57 = vpop.eup %1075 }
 0x196   : > { %v503_v51 = vadd.f32 %v502_v49, %v312_v25  ;;  %1089 = vtanh.f32 %v414_v47 }
 0x197   : > { %v1078_v58 = vpop.eup %1077 }
 0x198   : > { %1091 = vtanh.f32 %v503_v51 }
 0x199   : > { %1093 = vtanh.f32 %v501_v48  ;;  %v1080_v59 = vpop.eup %1079 }
 0x19a   : > { %1095 = vtanh.f32 %v497_v50 }
 0x19b   : > { %1097 = vtanh.f32 %v495_v52  ;;  %v1082_v60 = vpop.eup %1081  ;;  %v750_v52 = vpop.permute.xlu1 %749 }
 0x19c   : > { %1099 = vtanh.f32 %v491_v53 }
 0x19d   : > { %1101 = vtanh.f32 %v489_v54  ;;  %v1084_v61 = vpop.eup %1083 }
 0x19e   : > { %1103 = vtanh.f32 %v485_v55 }
 0x19f   : > { %1105 = vtanh.f32 %v483_v56  ;;  %v1086_v62 = vpop.eup %1085 }
 0x1a1   : > { %v1088_v63 = vpop.eup %1087 }
 0x1a3   : > { %v1090_v0 = vpop.eup %1089 }
 0x1a4   : > { %578 = vmatprep.subr.mxu0 %v1090_v0 }
 0x1a5   : > { %v1092_v1 = vpop.eup %1091  ;;  %579 = vmatpush1.msra.mxu0 %v1088_v63 }
 0x1a6   : > { %v1094_v7 = vpop.eup %1093  ;;  %667 = vmatprep.subr.mxu1 %v1092_v1  ;;  %580 = vmatprep.subr.mxu0 %v1086_v62 }
 0x1a7   : > { %v1096_v10 = vpop.eup %1095  ;;  %668 = vmatpush1.msra.mxu1 %v1094_v7  ;;  %581 = vmatpush1.msra.mxu0 %v1084_v61 }
 0x1a8   : > { %v1098_v11 = vpop.eup %1097  ;;  %669 = vmatprep.subr.mxu1 %v1096_v10  ;;  %582 = vmatprep.subr.mxu0 %v1082_v60  ;;  %v758_v60 = vpop.permute.xlu1 %757 }
 0x1a9   : > { %v1100_v12 = vpop.eup %1099  ;;  %670 = vmatpush1.msra.mxu1 %v1098_v11  ;;  %583 = vmatpush1.msra.mxu0 %v1080_v59 }
 0x1aa   : > { %v1102_v13 = vpop.eup %1101  ;;  %671 = vmatprep.subr.mxu1 %v1100_v12  ;;  %584 = vmatprep.subr.mxu0 %v1078_v58 }
 0x1ab   : > { %v1104_v15 = vpop.eup %1103  ;;  %672 = vmatpush1.msra.mxu1 %v1102_v13  ;;  %585 = vmatpush1.msra.mxu0 %v1076_v57  ;;  %v754_v57 = vpop.permute.xlu0 %753 }
 0x1ac   : > { %v1106_v16 = vpop.eup %1105  ;;  %673 = vmatprep.subr.mxu1 %v1104_v15  ;;  %957 = vmatmul.mubr.msk.f32.vlgmr.msra.gmra.mxu0 %vm314_vm0, %v522_v14 }
 0x1ad   : > { %674 = vmatpush1.msra.mxu1 %v1106_v16  ;;  %624 = vmatprep.mubr.f32.mxu0 %v1236_v6 }
 0x1ae   : > { %961 = vmatmul.mubr.msk.f32.vlgmr.msra.gmra.mxu1 %vm314_vm0, %v522_v14 }
 0x1af   : > { %713 = vmatprep.mubr.f32.mxu1 %v1236_v6 }
 0x1b0   : > { %958 = vmatmul.mubr.msk.f32.gmra.mxu0 %vm314_vm0, %v523_v17 }
 0x1b1   : > { %630 = vmatprep.mubr.f32.mxu0 %v1236_v6 }
 0x1b2   : > { %962 = vmatmul.mubr.msk.f32.gmra.mxu1 %vm314_vm0, %v523_v17 }
 0x1b3   : > { %719 = vmatprep.mubr.f32.mxu1 %v1236_v6 }
 0x1b4   : > { %959 = vmatmul.mubr.msk.f32.gmra.mxu0 %vm314_vm0, %v524_v18 }
 0x1b5   : > { %636 = vmatprep.mubr.f32.mxu0 %v1236_v6 }
 0x1b6   : > { %963 = vmatmul.mubr.msk.f32.gmra.mxu1 %vm314_vm0, %v524_v18 }
 0x1b7   : > { %725 = vmatprep.mubr.f32.mxu1 %v1236_v6 }
 0x1b8   : > { %960 = vmatmul.mubr.msk.f32.gmra.mxu0 %vm314_vm0, %v525_v19 }
 0x1ba   : > { %964 = vmatmul.mubr.msk.f32.gmra.mxu1 %vm314_vm0, %v525_v19 }
 0x26c   : > { %v620_v21 = vpop.f32.mrf.mxu0 }
 0x26d   : > { %v621_v24 = vadd.f32 %v620_v21, %v528_v20 }
 0x26e   : > { %v709_v23 = vpop.f32.mrf.mxu1  ;;  %v622_v25 = vpop.f32.mrf.mxu0 }
 0x26f   : > { %v710_v26 = vadd.f32 %v709_v23, %v528_v20  ;;  %v623_v28 = vadd.f32 %v622_v25, %v528_v20  ;;  %1107 = vtanh.f32 %v621_v24  ;;  %v762_v24 = vpop.permute.xlu1 %761 }
 0x270   : > { %v711_v27 = vpop.f32.mrf.mxu1  ;;  %v626_v29 = vpop.f32.mrf.mxu0 }
 0x271   : > { %v712_v30 = vadd.f32 %v711_v27, %v528_v20  ;;  %1109 = vtanh.f32 %v710_v26  ;;  %v627_v32 = vadd.f32 %v626_v29, %v532_v22 }
 0x272   : > { %v715_v31 = vpop.f32.mrf.mxu1  ;;  %1111 = vtanh.f32 %v623_v28  ;;  %v628_v33 = vpop.f32.mrf.mxu0 }
 0x273   : > { %v716_v6 = vadd.f32 %v715_v31, %v532_v22  ;;  %1113 = vtanh.f32 %v712_v30  ;;  %v629_v35 = vadd.f32 %v628_v33, %v532_v22 }
 0x274   : > { %1115 = vtanh.f32 %v627_v32  ;;  %v717_v4 = vpop.f32.mrf.mxu1  ;;  %v632_v3 = vpop.f32.mrf.mxu0 }
 0x275   : > { %1117 = vtanh.f32 %v716_v6  ;;  %v718_v36 = vadd.f32 %v717_v4, %v532_v22  ;;  %v633_v38 = vadd.f32 %v632_v3, %v536_v34 }
 0x276   : > { %1119 = vtanh.f32 %v629_v35  ;;  %v721_v37 = vpop.f32.mrf.mxu1  ;;  %v634_v5 = vpop.f32.mrf.mxu0 }
 0x277   : > { %1121 = vtanh.f32 %v718_v36  ;;  %v722_v39 = vadd.f32 %v721_v37, %v536_v34  ;;  %v635_v40 = vadd.f32 %v634_v5, %v536_v34 }
 0x278   : > { %1123 = vtanh.f32 %v633_v38  ;;  %v723_v2 = vpop.f32.mrf.mxu1  ;;  %v638_v43 = vpop.f32.mrf.mxu0 }
 0x279   : > { %1125 = vtanh.f32 %v722_v39  ;;  %v724_v41 = vadd.f32 %v723_v2, %v536_v34  ;;  %v639_v44 = vadd.f32 %v638_v43, %v540_v42 }
 0x27a   : > { %1127 = vtanh.f32 %v635_v40  ;;  %v727_v45 = vpop.f32.mrf.mxu1  ;;  %v640_v47 = vpop.f32.mrf.mxu0 }
 0x27b   : > { %1129 = vtanh.f32 %v724_v41  ;;  %v728_v46 = vadd.f32 %v727_v45, %v540_v42  ;;  %v641_v48 = vadd.f32 %v640_v47, %v540_v42  ;;  %v1241_v47 = vmov 1966171168  }
 0x27c   : > { %1131 = vtanh.f32 %v639_v44  ;;  %v729_v49 = vpop.f32.mrf.mxu1  ;;  %v1108_v50 = vpop.eup %1107 }
 0x27d   : > { %1133 = vtanh.f32 %v728_v46  ;;  %v730_v51 = vadd.f32 %v729_v49, %v540_v42  ;;  %v764_v7 = vmul.f32 %v1108_v50, %v750_v52 }
 0x27e   : > { %v1110_v53 = vpop.eup %1109  ;;  %1135 = vtanh.f32 %v641_v48  ;;  %v831_v48 = vunpack.c.l.s4 %v1241_v47 }
 0x27f   : > { %v1112_v54 = vpop.eup %1111  ;;  %1137 = vtanh.f32 %v730_v51  ;;  %v766_v13 = vmul.f32 %v1110_v53, %v750_v52 }
 0x280   : > { %v1114_v55 = vpop.eup %1113  ;;  %v765_v17 = vmul.f32 %v1112_v54, %v750_v52 }
 0x281   : > { %v1116_v56 = vpop.eup %1115  ;;  %v767_v21 = vmul.f32 %v1114_v55, %v750_v52 }
 0x282   : > { %v1118_v58 = vpop.eup %1117  ;;  %v768_v62 = vmul.f32 %v1116_v56, %v754_v57 }
 0x283   : > { %v1120_v59 = vpop.eup %1119  ;;  %v770_v0 = vmul.f32 %v1118_v58, %v754_v57 }
 0x284   : > { %v1122_v61 = vpop.eup %1121  ;;  %v769_v10 = vmul.f32 %v1120_v59, %v754_v57  ;;  %v780_v18 = vadd.f32 %v768_v62, %v764_v7 }
 0x285   : > { %v1124_v63 = vpop.eup %1123  ;;  %v771_v14 = vmul.f32 %v1122_v61, %v754_v57  ;;  %v798_v22 = vadd.f32 %v770_v0, %v766_v13  ;;  %v832_v57 = vunpack.c.0.s8 %v831_v48 }
 0x286   : > { %v1126_v1 = vpop.eup %1125  ;;  %v772_v11 = vmul.f32 %v1124_v63, %v758_v60  ;;  %v789_v26 = vadd.f32 %v769_v10, %v765_v17 }
 0x287   : > { %v1128_v12 = vpop.eup %1127  ;;  %v774_v15 = vmul.f32 %v1126_v1, %v758_v60  ;;  %v807_v30 = vadd.f32 %v771_v14, %v767_v21  ;;  %v835_v1 = vsub.s32 %v832_v57, %v1365_v9 }
 0x288   : > { %v1130_v16 = vpop.eup %1129  ;;  %v773_v19 = vmul.f32 %v1128_v12, %v758_v60  ;;  %v781_v28 = vadd.f32 %v780_v18, %v772_v11 }
 0x289   : > { %v1132_v20 = vpop.eup %1131  ;;  %v775_v23 = vmul.f32 %v1130_v16, %v758_v60  ;;  %v799_v32 = vadd.f32 %v798_v22, %v774_v15  ;;  %v818_v60 = vpop.permute.xlu0 %817 }
 0x28a   : > { %v1134_v25 = vpop.eup %1133  ;;  %v776_v27 = vmul.f32 %v1132_v20, %v762_v24  ;;  %v790_v35 = vadd.f32 %v789_v26, %v773_v19 }
 0x28b   : > { %v1136_v29 = vpop.eup %1135  ;;  %v778_v31 = vmul.f32 %v1134_v25, %v762_v24  ;;  %v808_v3 = vadd.f32 %v807_v30, %v775_v23 }
 0x28c   : > { %v1138_v6 = vpop.eup %1137  ;;  %v777_v33 = vmul.f32 %v1136_v29, %v762_v24  ;;  %v782_v34 = vadd.f32 %v781_v28, %v776_v27 }
 0x28d   : > { %v779_v4 = vmul.f32 %v1138_v6, %v762_v24  ;;  %v800_v36 = vadd.f32 %v799_v32, %v778_v31 }
 0x28e   : > { %v783_v37 = vrot.slane %v782_v34, 4  ;;  %v791_v38 = vadd.f32 %v790_v35, %v777_v33 }
 0x28f   : > { %v801_v39 = vrot.slane %v800_v36, 4  ;;  %v809_v5 = vadd.f32 %v808_v3, %v779_v4 }
 0x290   : > { %v784_v40 = vadd.f32 %v783_v37, %v782_v34  ;;  %v792_v2 = vrot.slane %v791_v38, 4 }
 0x291   : > { %v802_v41 = vadd.f32 %v801_v39, %v800_v36  ;;  %v810_v42 = vrot.slane %v809_v5, 4 }
 0x292   : > { %v793_v43 = vadd.f32 %v792_v2, %v791_v38  ;;  %v785_v44 = vrot.slane %v784_v40, 2 }
 0x293   : > { %v811_v45 = vadd.f32 %v810_v42, %v809_v5  ;;  %v803_v46 = vrot.slane %v802_v41, 2 }
 0x294   : > { %v786_v49 = vadd.f32 %v785_v44, %v784_v40  ;;  %v794_v50 = vrot.slane %v793_v43, 2 }
 0x295   : > { %v804_v51 = vadd.f32 %v803_v46, %v802_v41  ;;  %v812_v52 = vrot.slane %v811_v45, 2 }
 0x296   : > { %v787_v53 = vrot.slane %v786_v49, 1  ;;  %v795_v54 = vadd.f32 %v794_v50, %v793_v43 }
 0x297   : > { %v805_v55 = vrot.slane %v804_v51, 1  ;;  %v813_v56 = vadd.f32 %v812_v52, %v811_v45 }
 0x298   : > { %v788_v58 = vadd.f32 %v787_v53, %v786_v49  ;;  %v796_v59 = vrot.slane %v795_v54, 1 }
 0x299   : > { %v806_v61 = vadd.f32 %v805_v55, %v804_v51  ;;  %v814_v62 = vrot.slane %v813_v56, 1 }
 0x29a   : > { %v797_v63 = vadd.f32 %v796_v59, %v795_v54  ;;  %v820_v7 = vadd.f32 %v818_v60, %v788_v58 }
 0x29b   : > { %v815_v0 = vadd.f32 %v814_v62, %v813_v56  ;;  %v822_v11 = vadd.f32 %v818_v60, %v806_v61 }
 0x29c   : > { %v821_v10 = vadd.f32 %v818_v60, %v797_v63 }
 0x29d   : > { %v823_v12 = vadd.f32 %v818_v60, %v815_v0 }
 0x29e   : > { %v828_v13 = vcombine.low %v820_v7, %v821_v10 }
 0x29f   : > { %v829_v14 = vcombine.low %v822_v11, %v823_v12 }
 0x2a0   : > { %v836_v15 = vrot.slane %v828_v13, %v835_v1 }
 0x2a1   : > { %v843_v16 = vrot.slane %v829_v14, %v835_v1 }
 0x2a3   : > { %v844_v17 = vcombine.low %v836_v15, %v843_v16 }
 0x2a5   : > { %v851_v18 = vrot.slane %v844_v17, %v835_v1 }
 0x2a7   : > { %857 = vst.msk [vmem:[%s177_s29] sm:$0xf] %vm855_vm1, %v851_v18 }
 0x2a8   : > { %1178 = shalt.err (!%p1175_p0)
}
 0x2a9   : > { %s1179_s11 = scalar_lea.hbm %s871_s6, 64  ;;  %s1183_s20 = scalar_lea.hbm %s1452_s3, 256 }
 0x2aa   : > { %p1180_p1 = scmp.ne.s32.totalorder %s871_s6, %s1179_s11  ;;  %p1184_p4 = scmp.lt.s32.totalorder %s871_s6, %s1452_s3 }
 0x2ab   : > { %p1185_p7 = scmp.lt.s32.totalorder %s1183_s20, %s1179_s11 }
 0x2ac   : > { %p1181_p2 = pnand %p1180_p1, %p1301_p5 }
 0x2ad   : > { %p1186_p6 = por %p1185_p7, %p1184_p4 }
 0x2ae   : > { %p1182_p3 = pneg %p1181_p2 }
 0x2b0   : > { %p1187_p8 = pnand %p1186_p6, %p1182_p3 }
 0x2b2   : > { %1190 = shalt.err (!%p1187_p8)
}
 0x2b3   : > { %975 = dma.vmem_to_hbm [thread:$0]  (%p1301_p5), %s874_s30, 64, %s871_s6, %s859_s7  }
 0x2b4 PF: > { %p987_p9 = scmp.ge.s32.totalorder %s1229_s15, 2  ;;  %s885_s26 = sand.u32 1, %s1217_s12  }
 0x2b5   : > { %p1456_p10 = scmp.ne.s32.totalorder %s1454_s23, 0  ;;  %s886_s27 = scalar_lea.sflag [#allocation4], %s885_s26 }
 0x2b7   : > { %p982_p11 = pnand %p987_p9, %p1456_p10 }
 0x2b9   : > { %p983_p12 = pneg %p982_p11 }
 0x2bb   : > { %1212 = dma.done.wait (%p983_p12), %s886_s27, 64  }
 0x2bc   : > { %1214 = vsyncadd (%p983_p12), %s886_s27, 4294967232  ;;  %p14_p13 = scmp.ge.s32.totalorder %s1288_s18, 6   ;;  %s1457_s12 = smov %s1221_s13 }
 0x2bd   : > { %s1458_s13 = smov %s1225_s14  ;;  %s1459_s14 = smov %s1299_s21 }
 0x2be   : > { %s1460_s15 = smov %s1288_s18  ;;  %16 = sbr.rel (!%p14_p13) target bundleno = 4 (0x4), region = 73 }
 0x2c3   :  { %891 = vsyncpa [#allocation3], 1 }
 0x2c4   :  { %893 = vsyncpa [#allocation3 + $0x1], 1 }
 0x2c5   :  { %894 = vsyncpa [#allocation4], 1 }
 0x2c6   :  { %896 = vsyncpa [#allocation4 + $0x1], 1 }

</bundles_post_ra>
